<compile_context>
chip_gen: v7x
topology: tpu7x:2x2x1
jax: 0.10.0
libtpu: 0.0.40
codegen_flags: <defaults>
</compile_context>

<pallas_src>
import functools

import jax
import jax.numpy as jnp
from jax.experimental import pallas as pl
from jax.experimental.pallas import tpu as pltpu


def _fused_kd_kernel(sd_ref, td_ref, dlbl_ref, sc_ref, tc_ref, clbl_ref,
                     out_ref, *, domain_temp, class_temp,
                     domain_alpha, class_alpha, batch):
    """Computes all six KD-loss scalars for both tasks in one pass.

    sd_ref / td_ref : (B, Kd) student / teacher domain logits (native dtype)
    dlbl_ref        : (B, 1)  int32 domain labels
    sc_ref / tc_ref : (B, Kc) student / teacher class logits (native dtype)
    clbl_ref        : (B, 1)  int32 class labels
    out_ref         : (1, 128) f32 lane-dense output slab
                      lanes 0..5 = [d_kd, d_ce, d_total, c_kd, c_ce, c_total]
    """
    inv_b = 1.0 / float(batch)

    def task(s_ref, t_ref, lbl_ref, temp):
        s = s_ref[...].astype(jnp.float32)       # (B, K)
        t = t_ref[...].astype(jnp.float32)       # (B, K)
        lbl = lbl_ref[...]                       # (B, 1) int32
        b, k = s.shape
        inv_temp = 1.0 / temp

        # ---- student log-softmax(s / T) ---------------------------------
        # max(s / T) == max(s) / T  (T > 0), so compute max(s) once and
        # reuse it for the hard-CE path below.
        s_max = jnp.max(s, axis=1, keepdims=True)            # (B, 1)
        s_shift_t = (s - s_max) * inv_temp                    # s/T - max(s/T)
        s_lse_t = jnp.log(jnp.sum(jnp.exp(s_shift_t), axis=1, keepdims=True))
        s_logsoft_t = s_shift_t - s_lse_t                     # (B, K)

        # ---- teacher softmax(t / T) and its log -------------------------
        t_max = jnp.max(t, axis=1, keepdims=True)
        t_shift = (t - t_max) * inv_temp
        t_exp = jnp.exp(t_shift)
        t_sum = jnp.sum(t_exp, axis=1, keepdims=True)
        t_soft = t_exp * pl.reciprocal(t_sum)                 # exact reciprocal
        t_logsoft = t_shift - jnp.log(t_sum)

        # KLDivLoss(reduction='batchmean') * T^2:
        #   sum_{b,k} p_t * (log p_t - log p_s) / B * T^2
        kd = jnp.sum(t_soft * (t_logsoft - s_logsoft_t)) * inv_b * (temp * temp)

        # ---- hard CE on raw student logits (reuses s_max) ---------------
        h_shift = s - s_max
        h_lse = jnp.log(jnp.sum(jnp.exp(h_shift), axis=1, keepdims=True))
        h_logsoft = h_shift - h_lse                           # (B, K)

        lane_idx = jax.lax.broadcasted_iota(jnp.int32, (b, k), 1)
        mask = (lane_idx == lbl).astype(jnp.float32)          # one-hot, in-kernel
        ce = -jnp.sum(mask * h_logsoft) * inv_b
        return kd, ce

    d_kd, d_ce = task(sd_ref, td_ref, dlbl_ref, float(domain_temp))
    c_kd, c_ce = task(sc_ref, tc_ref, clbl_ref, float(class_temp))

    d_tot = domain_alpha * d_kd + (1.0 - domain_alpha) * d_ce
    c_tot = class_alpha * c_kd + (1.0 - class_alpha) * c_ce

    # Assemble a lane-dense (1, 128) row; lanes 0..5 hold the six scalars.
    lane = jax.lax.broadcasted_iota(jnp.int32, out_ref.shape, 1)
    row = (jnp.where(lane == 0, d_kd, 0.0)
           + jnp.where(lane == 1, d_ce, 0.0)
           + jnp.where(lane == 2, d_tot, 0.0)
           + jnp.where(lane == 3, c_kd, 0.0)
           + jnp.where(lane == 4, c_ce, 0.0)
           + jnp.where(lane == 5, c_tot, 0.0))
    out_ref[...] = row.astype(out_ref.dtype)


def multi_task_kd_losses(student_domain_logits, student_class_logits,
                         teacher_domain_logits, teacher_class_logits,
                         domain_labels, class_labels, *,
                         domain_alpha=0.8, class_alpha=0.6,
                         domain_temp=5.0, class_temp=3.0):
    """One fused Pallas call for both KD tasks; returns the six-loss dict."""
    b, k_dom = student_domain_logits.shape
    _, k_cls = student_class_logits.shape

    d_lbl = domain_labels.astype(jnp.int32).reshape(b, 1)
    c_lbl = class_labels.astype(jnp.int32).reshape(b, 1)

    kernel = functools.partial(
        _fused_kd_kernel,
        domain_temp=float(domain_temp), class_temp=float(class_temp),
        domain_alpha=float(domain_alpha), class_alpha=float(class_alpha),
        batch=b)

    out = pl.pallas_call(
        kernel,
        out_shape=jax.ShapeDtypeStruct((1, 128), jnp.float32),
        grid=(1,),
        in_specs=[
            pl.BlockSpec((b, k_dom), lambda i: (0, 0)),  # student domain logits
            pl.BlockSpec((b, k_dom), lambda i: (0, 0)),  # teacher domain logits
            pl.BlockSpec((b, 1), lambda i: (0, 0)),      # domain labels (int32)
            pl.BlockSpec((b, k_cls), lambda i: (0, 0)),  # student class logits
            pl.BlockSpec((b, k_cls), lambda i: (0, 0)),  # teacher class logits
            pl.BlockSpec((b, 1), lambda i: (0, 0)),      # class labels (int32)
        ],
        out_specs=pl.BlockSpec((1, 128), lambda i: (0, 0)),
        compiler_params=pltpu.CompilerParams(
            dimension_semantics=("arbitrary",)),
    )(student_domain_logits, teacher_domain_logits, d_lbl,
      student_class_logits, teacher_class_logits, c_lbl)

    return {
        "domain_kd_loss": out[0, 0],
        "domain_hard_loss": out[0, 1],
        "domain_total_loss": out[0, 2],
        "class_kd_loss": out[0, 3],
        "class_hard_loss": out[0, 4],
        "class_total_loss": out[0, 5],
    }


class MultiTaskKDLoss:
    """JAX/Pallas port of the PyTorch MultiTaskKDLoss module (fused kernel)."""

    def __init__(self, domain_alpha=0.8, class_alpha=0.6,
                 domain_temp=5.0, class_temp=3.0):
        self.domain_alpha = domain_alpha
        self.domain_temp = domain_temp
        self.class_alpha = class_alpha
        self.class_temp = class_temp

    def __call__(self, student_domain_logits, student_class_logits,
                 teacher_domain_logits, teacher_class_logits,
                 domain_labels, class_labels):
        return multi_task_kd_losses(
            student_domain_logits, student_class_logits,
            teacher_domain_logits, teacher_class_logits,
            domain_labels, class_labels,
            domain_alpha=self.domain_alpha, class_alpha=self.class_alpha,
            domain_temp=self.domain_temp, class_temp=self.class_temp)


if __name__ == "__main__":
    key = jax.random.PRNGKey(0)
    k1, k2, k3, k4, k5, k6 = jax.random.split(key, 6)

    B = 8             # batch
    NUM_DOMAINS = 4   # domain logits width
    NUM_CLASSES = 16  # class logits width

    student_domain_logits = jax.random.normal(k1, (B, NUM_DOMAINS), jnp.float32)
    teacher_domain_logits = jax.random.normal(k2, (B, NUM_DOMAINS), jnp.float32)
    student_class_logits = jax.random.normal(k3, (B, NUM_CLASSES), jnp.float32)
    teacher_class_logits = jax.random.normal(k4, (B, NUM_CLASSES), jnp.float32)
    domain_labels = jax.random.randint(k5, (B,), 0, NUM_DOMAINS, jnp.int32)
    class_labels = jax.random.randint(k6, (B,), 0, NUM_CLASSES, jnp.int32)

    loss_mod = MultiTaskKDLoss()
    losses = loss_mod(student_domain_logits, student_class_logits,
                      teacher_domain_logits, teacher_class_logits,
                      domain_labels, class_labels)
    losses = jax.tree_util.tree_map(jax.block_until_ready, losses)

    # Pure-JAX reference check (same math, no Pallas).
    def ref_task(s, t, lbl, temp, alpha):
        s_log_soft = jax.nn.log_softmax(s / temp, axis=1)
        t_soft = jax.nn.softmax(t / temp, axis=1)
        kd = jnp.sum(t_soft * (jnp.log(t_soft) - s_log_soft)) / s.shape[0]
        kd = kd * temp ** 2
        ce = -jnp.mean(
            jnp.take_along_axis(jax.nn.log_softmax(s, axis=1),
                                lbl[:, None], axis=1))
        return kd, ce, alpha * kd + (1 - alpha) * ce

    d_kd_r, d_ce_r, d_tot_r = ref_task(student_domain_logits,
                                       teacher_domain_logits,
                                       domain_labels, 5.0, 0.8)
    c_kd_r, c_ce_r, c_tot_r = ref_task(student_class_logits,
                                       teacher_class_logits,
                                       class_labels, 3.0, 0.6)

    assert jnp.allclose(losses["domain_kd_loss"], d_kd_r, atol=1e-5)
    assert jnp.allclose(losses["domain_hard_loss"], d_ce_r, atol=1e-5)
    assert jnp.allclose(losses["domain_total_loss"], d_tot_r, atol=1e-5)
    assert jnp.allclose(losses["class_kd_loss"], c_kd_r, atol=1e-5)
    assert jnp.allclose(losses["class_hard_loss"], c_ce_r, atol=1e-5)
    assert jnp.allclose(losses["class_total_loss"], c_tot_r, atol=1e-5)

    print("KERNEL_OK")
</pallas_src>

<mosaic_0001>
module attributes {stable_mosaic.version = 11 : i64} {
  func.func @_fused_kd_kernel(%arg0: i32, %arg1: memref<8x4xf32, #tpu.memory_space<vmem>>, %arg2: memref<8x4xf32, #tpu.memory_space<vmem>>, %arg3: memref<8x1xi32, #tpu.memory_space<vmem>>, %arg4: memref<8x16xf32, #tpu.memory_space<vmem>>, %arg5: memref<8x16xf32, #tpu.memory_space<vmem>>, %arg6: memref<8x1xi32, #tpu.memory_space<vmem>>, %arg7: memref<1x128xf32, #tpu.memory_space<vmem>>) attributes {dimension_semantics = [#tpu.dimension_semantics<arbitrary>], iteration_bounds = array<i64: 1>, scalar_prefetch = 0 : i64, scratch_operands = 0 : i64, tpu.core_type = #tpu.core_type<tc>, window_params = [{pipeline_mode = #tpu.pipeline_mode<synchronous>, transform_indices = @transform_0, window_bounds = array<i64: 8, 4>}, {pipeline_mode = #tpu.pipeline_mode<synchronous>, transform_indices = @transform_1, window_bounds = array<i64: 8, 4>}, {pipeline_mode = #tpu.pipeline_mode<synchronous>, transform_indices = @transform_2, window_bounds = array<i64: 8, 1>}, {pipeline_mode = #tpu.pipeline_mode<synchronous>, transform_indices = @transform_3, window_bounds = array<i64: 8, 16>}, {pipeline_mode = #tpu.pipeline_mode<synchronous>, transform_indices = @transform_4, window_bounds = array<i64: 8, 16>}, {pipeline_mode = #tpu.pipeline_mode<synchronous>, transform_indices = @transform_5, window_bounds = array<i64: 8, 1>}, {pipeline_mode = #tpu.pipeline_mode<synchronous>, transform_indices = @transform_6, window_bounds = array<i64: 1, 128>}]} {
    %c0 = arith.constant 0 : index
    %c0_0 = arith.constant 0 : index
    %0 = vector.load %arg1[%c0, %c0_0] : memref<8x4xf32, #tpu.memory_space<vmem>>, vector<8x4xf32>
    %c0_1 = arith.constant 0 : index
    %c0_2 = arith.constant 0 : index
    %1 = vector.load %arg2[%c0_1, %c0_2] : memref<8x4xf32, #tpu.memory_space<vmem>>, vector<8x4xf32>
    %c0_3 = arith.constant 0 : index
    %c0_4 = arith.constant 0 : index
    %2 = vector.load %arg3[%c0_3, %c0_4] : memref<8x1xi32, #tpu.memory_space<vmem>>, vector<8x1xi32>
    %cst = arith.constant dense<0xFF800000> : vector<8xf32>
    %3 = vector.multi_reduction <maximumf>, %0, %cst [1] : vector<8x4xf32> to vector<8xf32>
    %4 = vector.shape_cast %3 : vector<8xf32> to vector<8x1xf32>
    %5 = vector.broadcast %4 : vector<8x1xf32> to vector<8x4xf32>
    %6 = arith.subf %0, %5 : vector<8x4xf32>
    %cst_5 = arith.constant 2.000000e-01 : f32
    %7 = vector.broadcast %cst_5 : f32 to vector<8x4xf32>
    %8 = arith.mulf %6, %7 : vector<8x4xf32>
    %9 = math.exp %8 : vector<8x4xf32>
    %cst_6 = arith.constant dense<0.000000e+00> : vector<8xf32>
    %10 = vector.multi_reduction <add>, %9, %cst_6 [1] : vector<8x4xf32> to vector<8xf32>
    %11 = vector.shape_cast %10 : vector<8xf32> to vector<8x1xf32>
    %12 = math.log %11 : vector<8x1xf32>
    %13 = vector.broadcast %12 : vector<8x1xf32> to vector<8x4xf32>
    %14 = arith.subf %8, %13 : vector<8x4xf32>
    %cst_7 = arith.constant dense<0xFF800000> : vector<8xf32>
    %15 = vector.multi_reduction <maximumf>, %1, %cst_7 [1] : vector<8x4xf32> to vector<8xf32>
    %16 = vector.shape_cast %15 : vector<8xf32> to vector<8x1xf32>
    %17 = vector.broadcast %16 : vector<8x1xf32> to vector<8x4xf32>
    %18 = arith.subf %1, %17 : vector<8x4xf32>
    %cst_8 = arith.constant 2.000000e-01 : f32
    %19 = vector.broadcast %cst_8 : f32 to vector<8x4xf32>
    %20 = arith.mulf %18, %19 : vector<8x4xf32>
    %21 = math.exp %20 : vector<8x4xf32>
    %cst_9 = arith.constant dense<0.000000e+00> : vector<8xf32>
    %22 = vector.multi_reduction <add>, %21, %cst_9 [1] : vector<8x4xf32> to vector<8xf32>
    %23 = vector.shape_cast %22 : vector<8xf32> to vector<8x1xf32>
    %24 = tpu.reciprocal %23 : vector<8x1xf32> -> vector<8x1xf32>
    %25 = vector.broadcast %24 : vector<8x1xf32> to vector<8x4xf32>
    %26 = arith.mulf %21, %25 : vector<8x4xf32>
    %27 = math.log %23 : vector<8x1xf32>
    %28 = vector.broadcast %27 : vector<8x1xf32> to vector<8x4xf32>
    %29 = arith.subf %20, %28 : vector<8x4xf32>
    %30 = arith.subf %29, %14 : vector<8x4xf32>
    %31 = arith.mulf %26, %30 : vector<8x4xf32>
    %32 = vector.shape_cast %31 : vector<8x4xf32> to vector<1x8x4xf32>
    %cst_10 = arith.constant dense<0.000000e+00> : vector<1xf32>
    %33 = vector.multi_reduction <add>, %32, %cst_10 [1, 2] : vector<1x8x4xf32> to vector<1xf32>
    %34 = vector.shape_cast %33 : vector<1xf32> to vector<1x1x1xf32>
    %35 = vector.extract %34[0, 0, 0] : f32 from vector<1x1x1xf32>
    %cst_11 = arith.constant 1.250000e-01 : f32
    %36 = arith.mulf %35, %cst_11 : f32
    %cst_12 = arith.constant 2.500000e+01 : f32
    %37 = arith.mulf %36, %cst_12 : f32
    %38 = vector.broadcast %4 : vector<8x1xf32> to vector<8x4xf32>
    %39 = arith.subf %0, %38 : vector<8x4xf32>
    %40 = math.exp %39 : vector<8x4xf32>
    %cst_13 = arith.constant dense<0.000000e+00> : vector<8xf32>
    %41 = vector.multi_reduction <add>, %40, %cst_13 [1] : vector<8x4xf32> to vector<8xf32>
    %42 = vector.shape_cast %41 : vector<8xf32> to vector<8x1xf32>
    %43 = math.log %42 : vector<8x1xf32>
    %44 = vector.broadcast %43 : vector<8x1xf32> to vector<8x4xf32>
    %45 = arith.subf %39, %44 : vector<8x4xf32>
    %46 = tpu.iota {dimensions = array<i32: 1>} : vector<8x4xi32>
    %47 = vector.broadcast %2 : vector<8x1xi32> to vector<8x4xi32>
    %48 = arith.cmpi eq, %46, %47 : vector<8x4xi32>
    %49 = arith.extui %48 : vector<8x4xi1> to vector<8x4xi32>
    %50 = arith.sitofp %49 : vector<8x4xi32> to vector<8x4xf32>
    %51 = arith.mulf %50, %45 : vector<8x4xf32>
    %52 = vector.shape_cast %51 : vector<8x4xf32> to vector<1x8x4xf32>
    %cst_14 = arith.constant dense<0.000000e+00> : vector<1xf32>
    %53 = vector.multi_reduction <add>, %52, %cst_14 [1, 2] : vector<1x8x4xf32> to vector<1xf32>
    %54 = vector.shape_cast %53 : vector<1xf32> to vector<1x1x1xf32>
    %55 = vector.extract %54[0, 0, 0] : f32 from vector<1x1x1xf32>
    %cst_15 = arith.constant 0.000000e+00 : f32
    %56 = arith.subf %cst_15, %55 : f32
    %cst_16 = arith.constant 1.250000e-01 : f32
    %57 = arith.mulf %56, %cst_16 : f32
    %c0_17 = arith.constant 0 : index
    %c0_18 = arith.constant 0 : index
    %58 = vector.load %arg4[%c0_17, %c0_18] : memref<8x16xf32, #tpu.memory_space<vmem>>, vector<8x16xf32>
    %c0_19 = arith.constant 0 : index
    %c0_20 = arith.constant 0 : index
    %59 = vector.load %arg5[%c0_19, %c0_20] : memref<8x16xf32, #tpu.memory_space<vmem>>, vector<8x16xf32>
    %c0_21 = arith.constant 0 : index
    %c0_22 = arith.constant 0 : index
    %60 = vector.load %arg6[%c0_21, %c0_22] : memref<8x1xi32, #tpu.memory_space<vmem>>, vector<8x1xi32>
    %cst_23 = arith.constant dense<0xFF800000> : vector<8xf32>
    %61 = vector.multi_reduction <maximumf>, %58, %cst_23 [1] : vector<8x16xf32> to vector<8xf32>
    %62 = vector.shape_cast %61 : vector<8xf32> to vector<8x1xf32>
    %63 = vector.broadcast %62 : vector<8x1xf32> to vector<8x16xf32>
    %64 = arith.subf %58, %63 : vector<8x16xf32>
    %cst_24 = arith.constant 0.333333343 : f32
    %65 = vector.broadcast %cst_24 : f32 to vector<8x16xf32>
    %66 = arith.mulf %64, %65 : vector<8x16xf32>
    %67 = math.exp %66 : vector<8x16xf32>
    %cst_25 = arith.constant dense<0.000000e+00> : vector<8xf32>
    %68 = vector.multi_reduction <add>, %67, %cst_25 [1] : vector<8x16xf32> to vector<8xf32>
    %69 = vector.shape_cast %68 : vector<8xf32> to vector<8x1xf32>
    %70 = math.log %69 : vector<8x1xf32>
    %71 = vector.broadcast %70 : vector<8x1xf32> to vector<8x16xf32>
    %72 = arith.subf %66, %71 : vector<8x16xf32>
    %cst_26 = arith.constant dense<0xFF800000> : vector<8xf32>
    %73 = vector.multi_reduction <maximumf>, %59, %cst_26 [1] : vector<8x16xf32> to vector<8xf32>
    %74 = vector.shape_cast %73 : vector<8xf32> to vector<8x1xf32>
    %75 = vector.broadcast %74 : vector<8x1xf32> to vector<8x16xf32>
    %76 = arith.subf %59, %75 : vector<8x16xf32>
    %cst_27 = arith.constant 0.333333343 : f32
    %77 = vector.broadcast %cst_27 : f32 to vector<8x16xf32>
    %78 = arith.mulf %76, %77 : vector<8x16xf32>
    %79 = math.exp %78 : vector<8x16xf32>
    %cst_28 = arith.constant dense<0.000000e+00> : vector<8xf32>
    %80 = vector.multi_reduction <add>, %79, %cst_28 [1] : vector<8x16xf32> to vector<8xf32>
    %81 = vector.shape_cast %80 : vector<8xf32> to vector<8x1xf32>
    %82 = tpu.reciprocal %81 : vector<8x1xf32> -> vector<8x1xf32>
    %83 = vector.broadcast %82 : vector<8x1xf32> to vector<8x16xf32>
    %84 = arith.mulf %79, %83 : vector<8x16xf32>
    %85 = math.log %81 : vector<8x1xf32>
    %86 = vector.broadcast %85 : vector<8x1xf32> to vector<8x16xf32>
    %87 = arith.subf %78, %86 : vector<8x16xf32>
    %88 = arith.subf %87, %72 : vector<8x16xf32>
    %89 = arith.mulf %84, %88 : vector<8x16xf32>
    %90 = vector.shape_cast %89 : vector<8x16xf32> to vector<1x8x16xf32>
    %cst_29 = arith.constant dense<0.000000e+00> : vector<1xf32>
    %91 = vector.multi_reduction <add>, %90, %cst_29 [1, 2] : vector<1x8x16xf32> to vector<1xf32>
    %92 = vector.shape_cast %91 : vector<1xf32> to vector<1x1x1xf32>
    %93 = vector.extract %92[0, 0, 0] : f32 from vector<1x1x1xf32>
    %cst_30 = arith.constant 1.250000e-01 : f32
    %94 = arith.mulf %93, %cst_30 : f32
    %cst_31 = arith.constant 9.000000e+00 : f32
    %95 = arith.mulf %94, %cst_31 : f32
    %96 = vector.broadcast %62 : vector<8x1xf32> to vector<8x16xf32>
    %97 = arith.subf %58, %96 : vector<8x16xf32>
    %98 = math.exp %97 : vector<8x16xf32>
    %cst_32 = arith.constant dense<0.000000e+00> : vector<8xf32>
    %99 = vector.multi_reduction <add>, %98, %cst_32 [1] : vector<8x16xf32> to vector<8xf32>
    %100 = vector.shape_cast %99 : vector<8xf32> to vector<8x1xf32>
    %101 = math.log %100 : vector<8x1xf32>
    %102 = vector.broadcast %101 : vector<8x1xf32> to vector<8x16xf32>
    %103 = arith.subf %97, %102 : vector<8x16xf32>
    %104 = tpu.iota {dimensions = array<i32: 1>} : vector<8x16xi32>
    %105 = vector.broadcast %60 : vector<8x1xi32> to vector<8x16xi32>
    %106 = arith.cmpi eq, %104, %105 : vector<8x16xi32>
    %107 = arith.extui %106 : vector<8x16xi1> to vector<8x16xi32>
    %108 = arith.sitofp %107 : vector<8x16xi32> to vector<8x16xf32>
    %109 = arith.mulf %108, %103 : vector<8x16xf32>
    %110 = vector.shape_cast %109 : vector<8x16xf32> to vector<1x8x16xf32>
    %cst_33 = arith.constant dense<0.000000e+00> : vector<1xf32>
    %111 = vector.multi_reduction <add>, %110, %cst_33 [1, 2] : vector<1x8x16xf32> to vector<1xf32>
    %112 = vector.shape_cast %111 : vector<1xf32> to vector<1x1x1xf32>
    %113 = vector.extract %112[0, 0, 0] : f32 from vector<1x1x1xf32>
    %cst_34 = arith.constant 0.000000e+00 : f32
    %114 = arith.subf %cst_34, %113 : f32
    %cst_35 = arith.constant 1.250000e-01 : f32
    %115 = arith.mulf %114, %cst_35 : f32
    %cst_36 = arith.constant 8.000000e-01 : f32
    %116 = arith.mulf %cst_36, %37 : f32
    %cst_37 = arith.constant 2.000000e-01 : f32
    %117 = arith.mulf %cst_37, %57 : f32
    %118 = arith.addf %116, %117 : f32
    %cst_38 = arith.constant 6.000000e-01 : f32
    %119 = arith.mulf %cst_38, %95 : f32
    %cst_39 = arith.constant 4.000000e-01 : f32
    %120 = arith.mulf %cst_39, %115 : f32
    %121 = arith.addf %119, %120 : f32
    %122 = tpu.iota {dimensions = array<i32: 1>} : vector<1x128xi32>
    %c0_i32 = arith.constant 0 : i32
    %123 = vector.broadcast %c0_i32 : i32 to vector<1x128xi32>
    %124 = arith.cmpi eq, %122, %123 : vector<1x128xi32>
    %cst_40 = arith.constant 0.000000e+00 : f32
    %125 = vector.broadcast %37 : f32 to vector<1x128xf32>
    %126 = vector.broadcast %cst_40 : f32 to vector<1x128xf32>
    %127 = arith.select %124, %125, %126 : vector<1x128xi1>, vector<1x128xf32>
    %c1_i32 = arith.constant 1 : i32
    %128 = vector.broadcast %c1_i32 : i32 to vector<1x128xi32>
    %129 = arith.cmpi eq, %122, %128 : vector<1x128xi32>
    %cst_41 = arith.constant 0.000000e+00 : f32
    %130 = vector.broadcast %57 : f32 to vector<1x128xf32>
    %131 = vector.broadcast %cst_41 : f32 to vector<1x128xf32>
    %132 = arith.select %129, %130, %131 : vector<1x128xi1>, vector<1x128xf32>
    %133 = arith.addf %127, %132 : vector<1x128xf32>
    %c2_i32 = arith.constant 2 : i32
    %134 = vector.broadcast %c2_i32 : i32 to vector<1x128xi32>
    %135 = arith.cmpi eq, %122, %134 : vector<1x128xi32>
    %cst_42 = arith.constant 0.000000e+00 : f32
    %136 = vector.broadcast %118 : f32 to vector<1x128xf32>
    %137 = vector.broadcast %cst_42 : f32 to vector<1x128xf32>
    %138 = arith.select %135, %136, %137 : vector<1x128xi1>, vector<1x128xf32>
    %139 = arith.addf %133, %138 : vector<1x128xf32>
    %c3_i32 = arith.constant 3 : i32
    %140 = vector.broadcast %c3_i32 : i32 to vector<1x128xi32>
    %141 = arith.cmpi eq, %122, %140 : vector<1x128xi32>
    %cst_43 = arith.constant 0.000000e+00 : f32
    %142 = vector.broadcast %95 : f32 to vector<1x128xf32>
    %143 = vector.broadcast %cst_43 : f32 to vector<1x128xf32>
    %144 = arith.select %141, %142, %143 : vector<1x128xi1>, vector<1x128xf32>
    %145 = arith.addf %139, %144 : vector<1x128xf32>
    %c4_i32 = arith.constant 4 : i32
    %146 = vector.broadcast %c4_i32 : i32 to vector<1x128xi32>
    %147 = arith.cmpi eq, %122, %146 : vector<1x128xi32>
    %cst_44 = arith.constant 0.000000e+00 : f32
    %148 = vector.broadcast %115 : f32 to vector<1x128xf32>
    %149 = vector.broadcast %cst_44 : f32 to vector<1x128xf32>
    %150 = arith.select %147, %148, %149 : vector<1x128xi1>, vector<1x128xf32>
    %151 = arith.addf %145, %150 : vector<1x128xf32>
    %c5_i32 = arith.constant 5 : i32
    %152 = vector.broadcast %c5_i32 : i32 to vector<1x128xi32>
    %153 = arith.cmpi eq, %122, %152 : vector<1x128xi32>
    %cst_45 = arith.constant 0.000000e+00 : f32
    %154 = vector.broadcast %121 : f32 to vector<1x128xf32>
    %155 = vector.broadcast %cst_45 : f32 to vector<1x128xf32>
    %156 = arith.select %153, %154, %155 : vector<1x128xi1>, vector<1x128xf32>
    %157 = arith.addf %151, %156 : vector<1x128xf32>
    %c0_46 = arith.constant 0 : index
    %c0_47 = arith.constant 0 : index
    %158 = vector.load %arg7[%c0_46, %c0_47] : memref<1x128xf32, #tpu.memory_space<vmem>>, vector<1x128xf32>
    tpu.vector_store %arg7[%c0_46, %c0_47], %157 {strides = array<i32>} : memref<1x128xf32, #tpu.memory_space<vmem>>, vector<1x128xf32>,
    return
  }
  func.func @transform_0(%arg0: i32) -> (i32, i32) {
    %c0_i32 = arith.constant 0 : i32
    %c0_i32_0 = arith.constant 0 : i32
    %c0_i32_1 = arith.constant 0 : i32
    return %c0_i32, %c0_i32_0 : i32, i32
  }
  func.func @transform_1(%arg0: i32) -> (i32, i32) {
    %c0_i32 = arith.constant 0 : i32
    %c0_i32_0 = arith.constant 0 : i32
    %c0_i32_1 = arith.constant 0 : i32
    return %c0_i32, %c0_i32_0 : i32, i32
  }
  func.func @transform_2(%arg0: i32) -> (i32, i32) {
    %c0_i32 = arith.constant 0 : i32
    %c0_i32_0 = arith.constant 0 : i32
    %c0_i32_1 = arith.constant 0 : i32
    return %c0_i32, %c0_i32_0 : i32, i32
  }
  func.func @transform_3(%arg0: i32) -> (i32, i32) {
    %c0_i32 = arith.constant 0 : i32
    %c0_i32_0 = arith.constant 0 : i32
    %c0_i32_1 = arith.constant 0 : i32
    return %c0_i32, %c0_i32_0 : i32, i32
  }
  func.func @transform_4(%arg0: i32) -> (i32, i32) {
    %c0_i32 = arith.constant 0 : i32
    %c0_i32_0 = arith.constant 0 : i32
    %c0_i32_1 = arith.constant 0 : i32
    return %c0_i32, %c0_i32_0 : i32, i32
  }
  func.func @transform_5(%arg0: i32) -> (i32, i32) {
    %c0_i32 = arith.constant 0 : i32
    %c0_i32_0 = arith.constant 0 : i32
    %c0_i32_1 = arith.constant 0 : i32
    return %c0_i32, %c0_i32_0 : i32, i32
  }
  func.func @transform_6(%arg0: i32) -> (i32, i32) {
    %c0_i32 = arith.constant 0 : i32
    %c0_i32_0 = arith.constant 0 : i32
    %c0_i32_1 = arith.constant 0 : i32
    return %c0_i32, %c0_i32_0 : i32, i32
  }
}

</mosaic_0001>

<bundles_post_ra>
// kernel: tpu_custom_call.1
= control target key start
LH: loop header
LB: loop body
LE: loop exit
PB: predicated region body
PF: predicated region fallthrough
CT: control target
= control target key end

     0   :  { %vm102_vm0 = vcmask 130048   ;;  %vm27_vm1 = vcmask 31744   ;;  %s401_s0 = inlined_call_operand.vmem [shape: f32[8,4], index: 0, kind: input, shape index: {}]   ;;  %s402_s1 = inlined_call_operand.vmem [shape: f32[8,4], index: 1, kind: input, shape index: {}]   ;;  %s403_s2 = inlined_call_operand.vmem [shape: s32[8,1], index: 2, kind: input, shape index: {}]   ;;  %s404_s3 = inlined_call_operand.vmem [shape: f32[8,16], index: 3, kind: input, shape index: {}]   ;;  %s405_s4 = inlined_call_operand.vmem [shape: f32[8,16], index: 4, kind: input, shape index: {}]   ;;  %s406_s5 = inlined_call_operand.vmem [shape: s32[8,1], index: 5, kind: input, shape index: {}]   ;;  %s407_s6 = inlined_call_operand.hbm [shape: f32[1,128], index: 6, kind: output, shape index: {}]  }
   0x1   :  { %v99_v0 = vld [vmem:[%s404_s3] sm:$0xff] }
   0x2   :  { %v24_v1 = vld [vmem:[%s401_s0] sm:$0xff]  ;;  %v103_v3 = vsel %vm102_vm0, %v99_v0, -inf }
   0x3   :  { %v25_v2 = vld [vmem:[%s402_s1] sm:$0xff]  ;;  %v28_v4 = vsel %vm27_vm1, %v24_v1, -inf }
   0x4   :  { %v100_v5 = vld [vmem:[%s405_s4] sm:$0xff] }
   0x5   :  { %11 = vsyncpa [#allocation3], 0  ;;  %104 = vmax.xlane.f32.xlu1 %v103_v3  ;;  %29 = vmax.xlane.f32.xlu0 %v28_v4  ;;  %v41_v6 = vsel %vm27_vm1, %v25_v2, -inf  ;;  %v116_v7 = vsel %vm102_vm0, %v100_v5, -inf  ;;  %v283_v8 = vmov 0   ;;  %v101_v39 = vld [vmem:[%s406_s5] sm:$0xff]  ;;  %v78_v48 = vlaneseq }
   0x6   :  { %230 = vset.pattern.permute.xlu1 %v283_v8  ;;  %229 = vset.pattern.permute.xlu0 %v283_v8  ;;  %v26_v40 = vld [vmem:[%s403_s2] sm:$0xff]  ;;  %v284_v58 = vmov 0.0   ;;  %s285_s21 = smov [#allocation2]  }
   0x7   :  { %v369_v51 = vand.u32 127, %v78_v48  ;;  %s208_s22 = sshll.u32 %s285_s21, 4  ;;  %s209_s22 = int_to_ptr.vmem [resolvable:$true] %s208_s22 }
   0x8   :  { %s259_s23 = scalar_lea.vmem %s209_s22, 16  ;;  %s263_s24 = scalar_lea.vmem %s209_s22, 32 }
   0x9   :  { %42 = vmax.xlane.f32.xlu0 %v41_v6  ;;  %117 = vmax.xlane.f32.xlu1 %v116_v7  ;;  %vm178_vm4 = vcmp.eq.s32.totalorder %v369_v51, 0  ;;  %vm181_vm5 = vcmp.eq.s32.totalorder %v369_v51, 1  ;;  %vm185_vm6 = vcmp.eq.s32.totalorder %v369_v51, 2  ;;  %vm189_vm7 = vcmp.eq.s32.totalorder %v369_v51, 3  ;;  %p260_p0 = scmp.ne.s32.totalorder %s209_s22, %s259_s23  ;;  %p264_p1 = scmp.lt.s32.totalorder %s209_s22, %s209_s22 }
   0xa   :  { %vm193_vm8 = vcmp.eq.s32.totalorder %v369_v51, 4  ;;  %vm197_vm9 = vcmp.eq.s32.totalorder %v369_v51, 5  ;;  %p265_p2 = scmp.lt.s32.totalorder %s263_s24, %s259_s23 }
   0xc   :  { %p266_p3 = por %p265_p2, %p264_p1 }
   0xe   :  { %p267_p4 = pnand %p266_p3, %p260_p0 }
  0x92   :  { %v105_v9 = vpop.xlane.xlu1 %104  ;;  %v30_v10 = vpop.xlane.xlu0 %29 }
  0x93   :  { %v337_v11 = vsub.f32 %v99_v0, %v105_v9  ;;  %v339_v12 = vsub.f32 %v24_v1, %v30_v10 }
  0x95   :  { %v145_v13 = vmul.f32 1.442695, %v337_v11  ;;  %v343_v14 = vmul.f32 0.2, %v339_v12  ;;  %v70_v15 = vmul.f32 1.442695, %v339_v12 }
  0x96   :  { %v43_v16 = vpop.xlane.xlu0 %42  ;;  %v118_v17 = vpop.xlane.xlu1 %117  ;;  %v347_v18 = vmul.f32 0.33333334, %v337_v11 }
  0x97   :  { %231 = vpow2.f32 %v145_v13  ;;  %v33_v19 = vmul.f32 1.442695, %v343_v14  ;;  %v44_v20 = vsub.f32 %v25_v2, %v43_v16  ;;  %v119_v21 = vsub.f32 %v100_v5, %v118_v17 }
  0x98   :  { %233 = vpow2.f32 %v70_v15  ;;  %v108_v24 = vmul.f32 1.442695, %v347_v18 }
  0x99   :  { %v350_v22 = vmul.f32 0.2, %v44_v20  ;;  %235 = vpow2.f32 %v33_v19  ;;  %v352_v23 = vmul.f32 0.33333334, %v119_v21 }
  0x9b   :  { %v46_v25 = vmul.f32 1.442695, %v350_v22  ;;  %v121_v26 = vmul.f32 1.442695, %v352_v23 }
  0x9d   :  { %237 = vpow2.f32 %v46_v25 }
  0x9e   :  { %239 = vpow2.f32 %v121_v26 }
  0x9f   :  { %241 = vpow2.f32 %v108_v24 }
  0xa1   :  { %v232_v27 = vpop.eup %231 }
  0xa2   :  { %v234_v28 = vpop.eup %233  ;;  %v147_v29 = vsel %vm102_vm0, %v232_v27, 0.0 }
  0xa3   :  { %148 = vadd.xlane.f32.xlu1 %v147_v29  ;;  %v72_v30 = vsel %vm27_vm1, %v234_v28, 0.0  ;;  %v236_v31 = vpop.eup %235 }
  0xa4   :  { %73 = vadd.xlane.f32.xlu0 %v72_v30  ;;  %v35_v33 = vsel %vm27_vm1, %v236_v31, 0.0 }
  0xa7   :  { %v238_v32 = vpop.eup %237 }
  0xa8   :  { %v240_v34 = vpop.eup %239  ;;  %36 = vadd.xlane.f32.xlu0 %v35_v33  ;;  %v48_v35 = vsel %vm27_vm1, %v238_v32, 0.0 }
  0xa9   :  { %v242_v36 = vpop.eup %241  ;;  %49 = vadd.xlane.f32.xlu1 %v48_v35  ;;  %v123_v37 = vsel %vm102_vm0, %v240_v34, 0.0 }
  0xaa   :  { %v110_v38 = vsel %vm102_vm0, %v242_v36, 0.0 }
  0xac   :  { %124 = vadd.xlane.f32.xlu0 %v123_v37 }
  0xad   :  { %111 = vadd.xlane.f32.xlu1 %v110_v38 }
  0xbe   :  { %154 = vperm.xlu1 %230, %v101_v39  }
  0xc2   :  { %81 = vperm.xlu0 %229, %v26_v40  }
 0x130   :  { %v149_v42 = vpop.xlane.xlu1 %148 }
 0x131   :  { %v74_v41 = vpop.xlane.xlu0 %73 }
 0x132   :  { %243 = vlog2.f32 %v74_v41 }
 0x135   :  { %v37_v43 = vpop.xlane.xlu0 %36 }
 0x136   :  { %245 = vlog2.f32 %v37_v43  ;;  %v50_v44 = vpop.xlane.xlu1 %49 }
 0x137   :  { %247 = vlog2.f32 %v50_v44 }
 0x138   :  { %249 = vlog2.f32 %v149_v42 }
 0x139   :  { %v125_v45 = vpop.xlane.xlu0 %124  ;;  %251 = vrcp.f32 %v50_v44 }
 0x13a   :  { %v112_v46 = vpop.xlane.xlu1 %111  ;;  %253 = vlog2.f32 %v125_v45 }
 0x13b   :  { %255 = vlog2.f32 %v112_v46 }
 0x13c   :  { %v244_v47 = vpop.eup %243  ;;  %257 = vrcp.f32 %v125_v45 }
 0x13d   :  { %v76_v49 = vmul.f32 0.6931472, %v244_v47 }
 0x13e   :  { %v155_v3 = vpop.permute.xlu1 %154 }
 0x13f   :  { %v77_v55 = vsub.f32 %v339_v12, %v76_v49  ;;  %vm156_vm3 = vcmp.eq.s32.totalorder %v369_v51, %v155_v3 }
 0x140   :  { %v246_v50 = vpop.eup %245  ;;  %v217_v19 = vsel %vm156_vm3, 1.0, %v284_v58 }
 0x141   :  { %v39_v52 = vmul.f32 0.6931472, %v246_v50  ;;  %v82_v53 = vpop.permute.xlu0 %81  ;;  %v248_v54 = vpop.eup %247 }
 0x142   :  { %vm83_vm2 = vcmp.eq.s32.totalorder %v369_v51, %v82_v53  ;;  %v250_v56 = vpop.eup %249  ;;  %v54_v57 = vmul.f32 0.6931472, %v248_v54 }
 0x143   :  { %v216_v59 = vsel %vm83_vm2, 1.0, %v284_v58  ;;  %v252_v60 = vpop.eup %251  ;;  %v40_v63 = vsub.f32 %v343_v14, %v39_v52  ;;  %v151_v5 = vmul.f32 0.6931472, %v250_v56 }
 0x144   :  { %v86_v61 = vmul.f32 %v216_v59, %v77_v55  ;;  %v254_v62 = vpop.eup %253  ;;  %v55_v0 = vsub.f32 %v350_v22, %v54_v57  ;;  %v52_v7 = vmul.f32 %v252_v60, %v238_v32 }
 0x145   :  { %v256_v1 = vpop.eup %255  ;;  %v129_v2 = vmul.f32 0.6931472, %v254_v62  ;;  %v152_v17 = vsub.f32 %v337_v11, %v151_v5 }
 0x146   :  { %v87_v4 = vsel %vm27_vm1, %v86_v61, 0.0  ;;  %v114_v6 = vmul.f32 0.6931472, %v256_v1  ;;  %v56_v8 = vsub.f32 %v55_v0, %v40_v63  ;;  %v258_v9 = vpop.eup %257 }
 0x147   :  { %88 = vadd.xlane.f32.xlu0 %v87_v4  ;;  %v130_v13 = vsub.f32 %v352_v23, %v129_v2  ;;  %v127_v15 = vmul.f32 %v258_v9, %v240_v34  ;;  %v159_v22 = vmul.f32 %v217_v19, %v152_v17 }
 0x148   :  { %v115_v10 = vsub.f32 %v347_v18, %v114_v6  ;;  %v57_v12 = vmul.f32 %v56_v8, %v52_v7 }
 0x149   :  { %v160_v18 = vsel %vm102_vm0, %v159_v22, 0.0 }
 0x14a   :  { %v58_v14 = vsel %vm27_vm1, %v57_v12, 0.0  ;;  %v131_v16 = vsub.f32 %v130_v13, %v115_v10 }
 0x14b   :  { %59 = vadd.xlane.f32.xlu1 %v58_v14 }
 0x14c   :  { %v132_v20 = vmul.f32 %v131_v16, %v127_v15 }
 0x14e   :  { %v133_v21 = vsel %vm102_vm0, %v132_v20, 0.0 }
 0x14f   :  { %134 = vadd.xlane.f32.xlu1 %v133_v21 }
 0x153   :  { %161 = vadd.xlane.f32.xlu1 %v160_v18 }
 0x1d4   :  { %v89_v24 = vpop.xlane.xlu0 %88 }
 0x1d5   :  { %v90_v25 = vrot.slane %v89_v24, 4 }
 0x1d7   :  { %v91_v26 = vadd.f32 %v90_v25, %v89_v24 }
 0x1d8   :  { %v60_v27 = vpop.xlane.xlu1 %59 }
 0x1d9   :  { %v92_v23 = vrot.slane %v91_v26, 2  ;;  %v61_v28 = vrot.slane %v60_v27, 4 }
 0x1db   :  { %v62_v29 = vadd.f32 %v61_v28, %v60_v27  ;;  %v93_v30 = vadd.f32 %v92_v23, %v91_v26 }
 0x1dc   :  { %v135_v31 = vpop.xlane.xlu1 %134 }
 0x1dd   :  { %v63_v11 = vrot.slane %v62_v29, 2  ;;  %v136_v32 = vrot.slane %v135_v31, 4  ;;  %v94_v36 = vrot.slane %v93_v30, 1 }
 0x1df   :  { %v137_v33 = vadd.f32 %v136_v32, %v135_v31  ;;  %v64_v34 = vadd.f32 %v63_v11, %v62_v29  ;;  %v95_v43 = vadd.f32 %v94_v36, %v93_v30 }
 0x1e0   :  { %v162_v35 = vpop.xlane.xlu1 %161 }
 0x1e1   :  { %v138_v37 = vrot.slane %v137_v33, 2  ;;  %v163_v38 = vrot.slane %v162_v35, 4  ;;  %v65_v39 = vrot.slane %v64_v34, 1 }
 0x1e3   :  { %v164_v40 = vadd.f32 %v163_v38, %v162_v35  ;;  %v66_v41 = vadd.f32 %v65_v39, %v64_v34  ;;  %v139_v42 = vadd.f32 %v138_v37, %v137_v33 }
 0x1e5   :  { %v165_v44 = vrot.slane %v164_v40, 2  ;;  %218 = vpush %v66_v41  ;;  %v140_v45 = vrot.slane %v139_v42, 1 }
 0x1e6   :  { %220 = vpush %v95_v43 }
 0x1e7   :  { %v166_v46 = vadd.f32 %v165_v44, %v164_v40  ;;  %v141_v47 = vadd.f32 %v140_v45, %v139_v42 }
 0x1e9   :  { %222 = vpush %v141_v47  ;;  %v167_v48 = vrot.slane %v166_v46, 1 }
 0x1eb   :  { %v168_v49 = vadd.f32 %v167_v48, %v166_v46 }
 0x1ed   :  { %224 = vpush %v168_v49 }
 0x216   :  { %s219_s2 = spop %218 }
 0x217   :  { %s68_s5 = smul.f32 0.125, %s219_s2  ;;  %s221_s29 = spop %220 }
 0x218   :  { %s97_s30 = ssub.f32 0.0, %s221_s29 }
 0x219   :  { %s69_s7 = smul.f32 25.0, %s68_s5 }
 0x21a   :  { %s98_s8 = smul.f32 0.125, %s97_s30  ;;  %s223_s9 = spop %222 }
 0x21b   :  { %s172_s10 = smul.f32 0.8, %s69_s7  ;;  %v179_v50 = vstv %s69_s7 }
 0x21c   :  { %s173_s11 = smul.f32 0.2, %s98_s8  ;;  %v182_v52 = vstv %s98_s8  ;;  %v180_v53 = vsel %vm178_vm4, %v179_v50, 0.0 }
 0x21d   :  { %v183_v54 = vsel %vm181_vm5, %v182_v52, 0.0  ;;  %s143_s12 = smul.f32 0.125, %s223_s9 }
 0x21e   :  { %s174_s13 = sadd.f32 %s173_s11, %s172_s10  ;;  %s225_s14 = spop %224  ;;  %v184_v55 = vadd.f32 %v183_v54, %v180_v53 }
 0x21f   :  { %s144_s15 = smul.f32 9.0, %s143_s12  ;;  %s170_s16 = ssub.f32 0.0, %s225_s14 }
 0x220   :  { %v186_v56 = vstv %s174_s13 }
 0x221   :  { %v187_v57 = vsel %vm185_vm6, %v186_v56, 0.0  ;;  %v190_v58 = vstv %s144_s15  ;;  %s171_s17 = smul.f32 0.125, %s170_s16 }
 0x222   :  { %v188_v59 = vadd.f32 %v187_v57, %v184_v55  ;;  %s175_s18 = smul.f32 0.6, %s144_s15  ;;  %v191_v60 = vsel %vm189_vm7, %v190_v58, 0.0 }
 0x223   :  { %s176_s19 = smul.f32 0.4, %s171_s17  ;;  %v194_v62 = vstv %s171_s17 }
 0x224   :  { %v192_v61 = vadd.f32 %v191_v60, %v188_v59  ;;  %v195_v63 = vsel %vm193_vm8, %v194_v62, 0.0 }
 0x225   :  { %s177_s20 = sadd.f32 %s176_s19, %s175_s18 }
 0x226   :  { %v196_v0 = vadd.f32 %v195_v63, %v192_v61 }
 0x227   :  { %v198_v1 = vstv %s177_s20 }
 0x228   :  { %v199_v2 = vsel %vm197_vm9, %v198_v1, 0.0 }
 0x229   :  { %v200_v3 = vadd.f32 %v199_v2, %v196_v0 }
 0x22b   :  { %201 = vst [vmem:[#allocation2] sm:$0x1] %v200_v3 }
 0x22c   :  { %270 = shalt.err (!%p267_p4)
}
 0x22d   :  { %s271_s27 = scalar_lea.hbm %s407_s6, 16 }
 0x22e   :  { %p272_p5 = scmp.ne.s32.totalorder %s407_s6, %s271_s27  ;;  %p275_p6 = scmp.lt.u32.totalorder %s271_s27, %s407_s6 }
 0x230   :  { %p277_p7 = pnand %p275_p6, %p272_p5 }
 0x232   :  { %280 = shalt.err (!%p277_p7)
}
 0x233   :  { %211 = dma.vmem_to_hbm [thread:$0]  %s209_s22, 16, %s407_s6, [#allocation3]  }
 0x234   :  { %281 = dma.done.wait [#allocation3], 16  }
 0x235   :  { %282 = vsyncadd [#allocation3], 4294967280 }
 0x236   :  { %215 = vsyncpa [#allocation3], 1 }

</bundles_post_ra>
